<compile_context>
chip_gen: v7x
topology: tpu7x:2x2x1
jax: 0.10.0
libtpu: 0.0.40
codegen_flags: <defaults>
</compile_context>

<pallas_src>
import jax
import jax.numpy as jnp
from jax.experimental import pallas as pl
from jax.experimental.pallas import tpu as pltpu


def _lstm_cell_kernel(xh_ref, c_ref, w_ref, b_ref, h_next_ref, c_next_ref):
    """One LSTM cell step for one batch tile; weights stay resident in VMEM."""
    hdim = h_next_ref.shape[-1]

    # Single fused GEMM on the MXU, f32 accumulation.
    ifgo = jnp.dot(xh_ref[...], w_ref[...], preferred_element_type=jnp.float32)
    ifgo = ifgo + b_ref[...].astype(jnp.float32)

    # torch.chunk(4, dim=-1) order: i, f, g, o.
    # NOTE: for production sizes keep H a multiple of 128 so these gate slices
    # are whole 128-lane tiles (free views); at toy H they cut inside a vreg.
    i_gate = ifgo[:, 0 * hdim:1 * hdim]
    f_gate = ifgo[:, 1 * hdim:2 * hdim]
    g_gate = ifgo[:, 2 * hdim:3 * hdim]
    o_gate = ifgo[:, 3 * hdim:4 * hdim]

    # All elementwise math in f32 (v5e VPU/EUP have no bf16).
    c_prev = c_ref[...].astype(jnp.float32)
    c_next = (jax.nn.sigmoid(f_gate) * c_prev
              + jax.nn.sigmoid(i_gate) * jnp.tanh(g_gate))
    h_next = jax.nn.sigmoid(o_gate) * jnp.tanh(c_next)

    c_next_ref[...] = c_next.astype(c_next_ref.dtype)
    h_next_ref[...] = h_next.astype(h_next_ref.dtype)


def prepare_lstm_params(w_x, w_h, b_h, *, matmul_dtype=jnp.bfloat16):
    """One-time parameter prep (do at init time, NOT per step).

    w_x: [4H, input_size] (input_lin.weight, no bias)
    w_h: [4H, H]          (hidden_lin.weight)
    b_h: [4H]             (hidden_lin.bias)

    Returns:
      w_cat_t: [input_size + H, 4H] in `matmul_dtype` (fused, lane-dense RHS)
      b2d    : [1, 4H] f32
    """
    w_cat = jnp.concatenate([w_x, w_h], axis=1)            # [4H, in + H]
    w_cat_t = jnp.transpose(w_cat).astype(matmul_dtype)    # [in + H, 4H]
    b2d = b_h.reshape(1, -1).astype(jnp.float32)
    return w_cat_t, b2d


def lstm_cell(x, h, c, w_cat_t, b2d, *, tile_b=None):
    """Pallas-backed LSTM cell step.

    x: [B, input_size], h/c: [B, H]
    w_cat_t / b2d: from prepare_lstm_params().
    Returns (h_next, c_next), each [B, H].
    """
    B, H = h.shape
    K_cat, H4 = w_cat_t.shape
    assert H4 == 4 * H
    assert c.shape == (B, H)
    assert x.shape == (B, K_cat - H)

    if tile_b is None:
        tile_b = B if B <= 256 else 256
    assert B % tile_b == 0, "pad the batch to a multiple of tile_b"

    # Per-step activation prep: one concat (+ optional downcast for the MXU).
    xh = jnp.concatenate([x, h], axis=-1).astype(w_cat_t.dtype)   # [B, in + H]

    grid = (B // tile_b,)

    flops = 2 * B * K_cat * H4 + 10 * B * H
    transcendentals = 5 * B * H
    bytes_accessed = (xh.size * xh.dtype.itemsize
                      + c.size * c.dtype.itemsize
                      + w_cat_t.size * w_cat_t.dtype.itemsize
                      + b2d.size * 4
                      + B * H * (h.dtype.itemsize + c.dtype.itemsize))

    h_next, c_next = pl.pallas_call(
        _lstm_cell_kernel,
        out_shape=(
            jax.ShapeDtypeStruct((B, H), h.dtype),
            jax.ShapeDtypeStruct((B, H), c.dtype),
        ),
        grid_spec=pltpu.PrefetchScalarGridSpec(
            num_scalar_prefetch=0,
            grid=grid,
            in_specs=[
                pl.BlockSpec((tile_b, K_cat), lambda b: (b, 0)),   # [x, h] tile
                pl.BlockSpec((tile_b, H), lambda b: (b, 0)),       # c tile
                pl.BlockSpec((K_cat, H4), lambda b: (0, 0)),       # weights: resident
                pl.BlockSpec((1, H4), lambda b: (0, 0)),           # bias: resident
            ],
            out_specs=(
                pl.BlockSpec((tile_b, H), lambda b: (b, 0)),
                pl.BlockSpec((tile_b, H), lambda b: (b, 0)),
            ),
        ),
        compiler_params=pltpu.CompilerParams(
            dimension_semantics=("parallel",),
            # <= physical VMEM on all targets (v7x has 64 MiB); raise/tune for
            # large weight-resident configurations.
            vmem_limit_bytes=48 * 1024 * 1024,
        ),
        cost_estimate=pl.CostEstimate(
            flops=flops,
            transcendentals=transcendentals,
            bytes_accessed=bytes_accessed,
        ),
    )(xh, c, w_cat_t, b2d)
    return h_next, c_next


def lstm_cell_ref(x, h, c, w_x, w_h, b_h, matmul_dtype=jnp.float32):
    """Pure-JAX reference matching the PyTorch forward (layer_norm=False)."""
    w_cat_t = jnp.concatenate([w_x, w_h], axis=1).T.astype(matmul_dtype)
    xh = jnp.concatenate([x, h], axis=-1).astype(matmul_dtype)
    ifgo = jnp.dot(xh, w_cat_t, preferred_element_type=jnp.float32) + b_h
    H = h.shape[-1]
    i, f, g, o = [ifgo[:, k * H:(k + 1) * H] for k in range(4)]
    c_next = jax.nn.sigmoid(f) * c + jax.nn.sigmoid(i) * jnp.tanh(g)
    h_next = jax.nn.sigmoid(o) * jnp.tanh(c_next)
    return h_next, c_next


def _make_inputs(key, batch, input_size, hidden):
    kx, kh, kc, kwh, kbh, kwx = jax.random.split(key, 6)
    x = jax.random.normal(kx, (batch, input_size), dtype=jnp.float32)
    h = jax.random.normal(kh, (batch, hidden), dtype=jnp.float32)
    c = jax.random.normal(kc, (batch, hidden), dtype=jnp.float32)
    # hidden_lin: Linear(hidden, 4*hidden) -> weight [4H, H], bias [4H]
    # input_lin : Linear(input_size, 4*hidden, bias=False) -> weight [4H, in]
    w_h = 0.1 * jax.random.normal(kwh, (4 * hidden, hidden), dtype=jnp.float32)
    b_h = 0.1 * jax.random.normal(kbh, (4 * hidden,), dtype=jnp.float32)
    w_x = 0.1 * jax.random.normal(kwx, (4 * hidden, input_size), dtype=jnp.float32)
    return x, h, c, w_x, w_h, b_h


if __name__ == "__main__":
    key = jax.random.PRNGKey(0)
    k_small, k_big = jax.random.split(key, 2)

    # ---- Small module-spec shapes: batch=8, input=32, hidden=32 ----
    x, h, c, w_x, w_h, b_h = _make_inputs(k_small, batch=8, input_size=32, hidden=32)
    h_ref32, c_ref32 = lstm_cell_ref(x, h, c, w_x, w_h, b_h)

    # f32 MXU path: bit-tight vs f32 reference.
    params_f32 = prepare_lstm_params(w_x, w_h, b_h, matmul_dtype=jnp.float32)
    h1, c1 = lstm_cell(x, h, c, *params_f32)
    jax.block_until_ready((h1, c1))
    assert jnp.allclose(h1, h_ref32, atol=1e-5, rtol=1e-5)
    assert jnp.allclose(c1, c_ref32, atol=1e-5, rtol=1e-5)

    # bf16 MXU path (default for perf): loose vs f32 ref, tight vs bf16-matmul ref.
    params_bf16 = prepare_lstm_params(w_x, w_h, b_h, matmul_dtype=jnp.bfloat16)
    h2, c2 = lstm_cell(x, h, c, *params_bf16)
    jax.block_until_ready((h2, c2))
    h_refbf, c_refbf = lstm_cell_ref(x, h, c, w_x, w_h, b_h, matmul_dtype=jnp.bfloat16)
    assert jnp.allclose(h2, h_ref32, atol=5e-2, rtol=5e-2)
    assert jnp.allclose(c2, c_ref32, atol=5e-2, rtol=5e-2)
    assert jnp.allclose(h2, h_refbf, atol=2e-3, rtol=2e-3)
    assert jnp.allclose(c2, c_refbf, atol=2e-3, rtol=2e-3)

    # ---- Multi-tile batch grid (weights resident across tiles), bf16 MXU ----
    xb, hb, cb, w_xb, w_hb, b_hb = _make_inputs(k_big, batch=32, input_size=64, hidden=128)
    params_b = prepare_lstm_params(w_xb, w_hb, b_hb, matmul_dtype=jnp.bfloat16)
    h3, c3 = lstm_cell(xb, hb, cb, *params_b, tile_b=16)   # grid = (2,), "parallel"
    jax.block_until_ready((h3, c3))
    h_refb, c_refb = lstm_cell_ref(xb, hb, cb, w_xb, w_hb, b_hb, matmul_dtype=jnp.bfloat16)
    assert jnp.allclose(h3, h_refb, atol=2e-3, rtol=2e-3)
    assert jnp.allclose(c3, c_refb, atol=2e-3, rtol=2e-3)

    print("KERNEL_OK")
</pallas_src>

<mosaic_0001>
module attributes {stable_mosaic.version = 11 : i64} {
  func.func @_lstm_cell_kernel(%arg0: i32, %arg1: memref<8x64xf32, #tpu.memory_space<vmem>>, %arg2: memref<8x32xf32, #tpu.memory_space<vmem>>, %arg3: memref<64x128xf32, #tpu.memory_space<vmem>>, %arg4: memref<1x128xf32, #tpu.memory_space<vmem>>, %arg5: memref<8x32xf32, #tpu.memory_space<vmem>>, %arg6: memref<8x32xf32, #tpu.memory_space<vmem>>) attributes {dimension_semantics = [#tpu.dimension_semantics<parallel>], iteration_bounds = array<i64: 1>, scalar_prefetch = 0 : i64, scratch_operands = 0 : i64, tpu.core_type = #tpu.core_type<tc>, window_params = [{transform_indices = @transform_0, window_bounds = array<i64: 8, 64>}, {transform_indices = @transform_1, window_bounds = array<i64: 8, 32>}, {pipeline_mode = #tpu.pipeline_mode<synchronous>, transform_indices = @transform_2, window_bounds = array<i64: 64, 128>}, {pipeline_mode = #tpu.pipeline_mode<synchronous>, transform_indices = @transform_3, window_bounds = array<i64: 1, 128>}, {transform_indices = @transform_4, window_bounds = array<i64: 8, 32>}, {transform_indices = @transform_5, window_bounds = array<i64: 8, 32>}]} {
    %c0 = arith.constant 0 : index
    %c0_0 = arith.constant 0 : index
    %0 = vector.load %arg1[%c0, %c0_0] : memref<8x64xf32, #tpu.memory_space<vmem>>, vector<8x64xf32>
    %c0_1 = arith.constant 0 : index
    %c0_2 = arith.constant 0 : index
    %1 = vector.load %arg3[%c0_1, %c0_2] : memref<64x128xf32, #tpu.memory_space<vmem>>, vector<64x128xf32>
    %cst = arith.constant dense<0.000000e+00> : vector<8x128xf32>
    %2 = tpu.matmul %0, %1, %cst {dimension_numbers = #tpu.dot_dimension_numbers<[1], [0], [0], [1], [0, 0, 1, 1], [], []>} : vector<8x64xf32>, vector<64x128xf32>, vector<8x128xf32> -> vector<8x128xf32>
    %c0_3 = arith.constant 0 : index
    %c0_4 = arith.constant 0 : index
    %3 = vector.load %arg4[%c0_3, %c0_4] : memref<1x128xf32, #tpu.memory_space<vmem>>, vector<1x128xf32>
    %4 = vector.broadcast %3 : vector<1x128xf32> to vector<8x128xf32>
    %5 = arith.addf %2, %4 : vector<8x128xf32>
    %6 = vector.extract_strided_slice %5 {offsets = [0, 0], sizes = [8, 32], strides = [1, 1]} : vector<8x128xf32> to vector<8x32xf32>
    %7 = vector.extract_strided_slice %5 {offsets = [0, 32], sizes = [8, 32], strides = [1, 1]} : vector<8x128xf32> to vector<8x32xf32>
    %8 = vector.extract_strided_slice %5 {offsets = [0, 64], sizes = [8, 32], strides = [1, 1]} : vector<8x128xf32> to vector<8x32xf32>
    %9 = vector.extract_strided_slice %5 {offsets = [0, 96], sizes = [8, 32], strides = [1, 1]} : vector<8x128xf32> to vector<8x32xf32>
    %c0_5 = arith.constant 0 : index
    %c0_6 = arith.constant 0 : index
    %10 = vector.load %arg2[%c0_5, %c0_6] : memref<8x32xf32, #tpu.memory_space<vmem>>, vector<8x32xf32>
    %11 = arith.negf %7 : vector<8x32xf32>
    %12 = math.exp %11 : vector<8x32xf32>
    %cst_7 = arith.constant 1.000000e+00 : f32
    %13 = vector.broadcast %cst_7 : f32 to vector<8x32xf32>
    %14 = arith.addf %13, %12 : vector<8x32xf32>
    %15 = arith.divf %13, %14 : vector<8x32xf32>
    %16 = arith.mulf %15, %10 : vector<8x32xf32>
    %17 = arith.negf %6 : vector<8x32xf32>
    %18 = math.exp %17 : vector<8x32xf32>
    %cst_8 = arith.constant 1.000000e+00 : f32
    %19 = vector.broadcast %cst_8 : f32 to vector<8x32xf32>
    %20 = arith.addf %19, %18 : vector<8x32xf32>
    %21 = arith.divf %19, %20 : vector<8x32xf32>
    %22 = math.tanh %8 : vector<8x32xf32>
    %23 = arith.mulf %21, %22 : vector<8x32xf32>
    %24 = arith.addf %16, %23 : vector<8x32xf32>
    %25 = arith.negf %9 : vector<8x32xf32>
    %26 = math.exp %25 : vector<8x32xf32>
    %cst_9 = arith.constant 1.000000e+00 : f32
    %27 = vector.broadcast %cst_9 : f32 to vector<8x32xf32>
    %28 = arith.addf %27, %26 : vector<8x32xf32>
    %29 = arith.divf %27, %28 : vector<8x32xf32>
    %30 = math.tanh %24 : vector<8x32xf32>
    %31 = arith.mulf %29, %30 : vector<8x32xf32>
    %c0_10 = arith.constant 0 : index
    %c0_11 = arith.constant 0 : index
    %32 = vector.load %arg6[%c0_10, %c0_11] : memref<8x32xf32, #tpu.memory_space<vmem>>, vector<8x32xf32>
    tpu.vector_store %arg6[%c0_10, %c0_11], %24 {strides = array<i32>} : memref<8x32xf32, #tpu.memory_space<vmem>>, vector<8x32xf32>,
    %c0_12 = arith.constant 0 : index
    %c0_13 = arith.constant 0 : index
    %33 = vector.load %arg5[%c0_12, %c0_13] : memref<8x32xf32, #tpu.memory_space<vmem>>, vector<8x32xf32>
    tpu.vector_store %arg5[%c0_12, %c0_13], %31 {strides = array<i32>} : memref<8x32xf32, #tpu.memory_space<vmem>>, vector<8x32xf32>,
    return
  }
  func.func @transform_0(%arg0: i32) -> (i32, i32) {
    %c0_i32 = arith.constant 0 : i32
    %c0_i32_0 = arith.constant 0 : i32
    return %arg0, %c0_i32 : i32, i32
  }
  func.func @transform_1(%arg0: i32) -> (i32, i32) {
    %c0_i32 = arith.constant 0 : i32
    %c0_i32_0 = arith.constant 0 : i32
    return %arg0, %c0_i32 : i32, i32
  }
  func.func @transform_2(%arg0: i32) -> (i32, i32) {
    %c0_i32 = arith.constant 0 : i32
    %c0_i32_0 = arith.constant 0 : i32
    %c0_i32_1 = arith.constant 0 : i32
    return %c0_i32, %c0_i32_0 : i32, i32
  }
  func.func @transform_3(%arg0: i32) -> (i32, i32) {
    %c0_i32 = arith.constant 0 : i32
    %c0_i32_0 = arith.constant 0 : i32
    %c0_i32_1 = arith.constant 0 : i32
    return %c0_i32, %c0_i32_0 : i32, i32
  }
  func.func @transform_4(%arg0: i32) -> (i32, i32) {
    %c0_i32 = arith.constant 0 : i32
    %c0_i32_0 = arith.constant 0 : i32
    return %arg0, %c0_i32 : i32, i32
  }
  func.func @transform_5(%arg0: i32) -> (i32, i32) {
    %c0_i32 = arith.constant 0 : i32
    %c0_i32_0 = arith.constant 0 : i32
    return %arg0, %c0_i32 : i32, i32
  }
}

</mosaic_0001>

<bundles_post_ra>
// kernel: tpu_custom_call.1
= control target key start
LH: loop header
LB: loop body
LE: loop exit
PB: predicated region body
PF: predicated region fallthrough
CT: control target
= control target key end

     0   :  { %11 = vsyncpa [#allocation3], 0  ;;  %s511_s0 = inlined_call_operand.hbm [shape: f32[8,64], index: 0, kind: input, shape index: {}]   ;;  %s512_s1 = inlined_call_operand.hbm [shape: f32[8,32], index: 1, kind: input, shape index: {}]   ;;  %s513_s2 = inlined_call_operand.hbm [shape: f32[64,128], index: 2, kind: input, shape index: {}]   ;;  %s514_s3 = inlined_call_operand.vmem [shape: f32[1,128], index: 3, kind: input, shape index: {}]   ;;  %s515_s4 = inlined_call_operand.hbm [shape: f32[8,32], index: 4, kind: output, shape index: {0}]   ;;  %s516_s5 = inlined_call_operand.hbm [shape: f32[8,32], index: 5, kind: output, shape index: {1}]  }
   0x1   :  { %12 = vsyncpa [#allocation6], 0 }
   0x2   :  { %13 = vsyncpa [#allocation4], 0 }
   0x3   :  { %14 = vsyncpa [#allocation10], 0  ;;  %s400_s18 = smov [#allocation5]   ;;  %s401_s20 = smov [#allocation2]  }
   0x4   :  { %s31_s19 = sshll.u32 %s400_s18, 4  ;;  %s21_s21 = sshll.u32 %s401_s20, 4  ;;  %s32_s19 = int_to_ptr.vmem [resolvable:$true] %s31_s19  ;;  %s22_s21 = int_to_ptr.vmem [resolvable:$true] %s21_s21 }
   0x5   :  { %s282_s24 = scalar_lea.hbm %s512_s1, 128 }
   0x6   :  { %p283_p0 = scmp.ne.s32.totalorder %s512_s1, %s282_s24  ;;  %p286_p1 = scmp.lt.u32.totalorder %s282_s24, %s512_s1 }
   0x8   :  { %p288_p2 = pnand %p286_p1, %p283_p0 }
   0xa   :  { %291 = shalt.err (!%p288_p2)
}
   0xb   :  { %s292_s29 = scalar_lea.vmem %s32_s19, 128  ;;  %p297_p4 = scmp.lt.s32.totalorder %s32_s19, %s32_s19 }
   0xc   :  { %p293_p3 = scmp.ne.s32.totalorder %s32_s19, %s292_s29  ;;  %p298_p5 = scmp.lt.s32.totalorder %s292_s29, %s292_s29 }
   0xe   :  { %p299_p6 = por %p298_p5, %p297_p4 }
  0x10   :  { %p300_p7 = pnand %p299_p6, %p293_p3 }
  0x12   :  { %303 = shalt.err (!%p300_p7)
}
  0x13   :  { %34 = dma.hbm_to_vmem [thread:$0]  %s512_s1, 128, %s32_s19, [#allocation6]  }
  0x14   :  { %s304_s9 = scalar_lea.hbm %s511_s0, 128 }
  0x15   :  { %p305_p8 = scmp.ne.s32.totalorder %s511_s0, %s304_s9  ;;  %p308_p9 = scmp.lt.u32.totalorder %s304_s9, %s511_s0 }
  0x17   :  { %p310_p10 = pnand %p308_p9, %p305_p8 }
  0x19   :  { %313 = shalt.err (!%p310_p10)
}
  0x1a   :  { %s314_s14 = scalar_lea.vmem %s22_s21, 128  ;;  %p319_p12 = scmp.lt.s32.totalorder %s22_s21, %s22_s21 }
  0x1b   :  { %p315_p11 = scmp.ne.s32.totalorder %s22_s21, %s314_s14  ;;  %p320_p13 = scmp.lt.s32.totalorder %s314_s14, %s314_s14 }
  0x1d   :  { %p321_p0 = por %p320_p13, %p319_p12 }
  0x1f   :  { %p322_p1 = pnand %p321_p0, %p315_p11 }
  0x21   :  { %325 = shalt.err (!%p322_p1)
}
  0x22   :  { %24 = dma.hbm_to_vmem [thread:$0]  %s511_s0, 128, %s22_s21, [#allocation3]  }
  0x23   :  { %s402_s16 = smov [#allocation7]   ;;  %s326_s20 = scalar_lea.hbm %s513_s2, 1024 }
  0x24   :  { %s40_s17 = sshll.u32 %s402_s16, 4  ;;  %p327_p2 = scmp.ne.s32.totalorder %s513_s2, %s326_s20  ;;  %s41_s17 = int_to_ptr.vmem [resolvable:$true] %s40_s17 }
  0x25   :  { %p330_p3 = scmp.lt.u32.totalorder %s326_s20, %s513_s2 }
  0x27   :  { %p332_p4 = pnand %p330_p3, %p327_p2 }
  0x29   :  { %335 = shalt.err (!%p332_p4)
}
  0x2a   :  { %s336_s26 = scalar_lea.vmem %s41_s17, 1024  ;;  %p341_p6 = scmp.lt.s32.totalorder %s41_s17, %s41_s17 }
  0x2b   :  { %p337_p5 = scmp.ne.s32.totalorder %s41_s17, %s336_s26  ;;  %p342_p7 = scmp.lt.s32.totalorder %s336_s26, %s336_s26 }
  0x2d   :  { %p343_p8 = por %p342_p7, %p341_p6 }
  0x2f   :  { %p344_p9 = pnand %p343_p8, %p337_p5 }
  0x31   :  { %347 = shalt.err (!%p344_p9)
}
  0x32   :  { %s403_s0 = smov 128   ;;  %s404_s21 = smov 8  }
  0x33   :  { %46 = dma.hbm_to_vmem [thread:$0]  %s513_s2, 1024, %s41_s17, [#allocation6], %s403_s0, %s403_s0, %s404_s21  }
  0x34   :  { %392 = dma.done.wait [#allocation3], 128  }
  0x35   :  { %393 = vsyncadd [#allocation3], 4294967168 }
  0x36   :  { %394 = dma.done.wait [#allocation6], 1152  }
  0x37   :  { %395 = vsyncadd [#allocation6], 4294966144  ;;  %v405_v0 = vmov 0.0|0.0   ;;  %vm406_vm0 = vmmov 0   ;;  %v407_v1 = vmov 0.0   ;;  %v59_v2 = vld [vmem:[#allocation7] sm:$0xff] }
  0x38   :  { %249 = vmatprep.subr.bf16.mxu0 %v405_v0  ;;  %246 = vmatprep.mubr.msk.f32.mxu0 %vm406_vm0, %v407_v1  ;;  %v60_v3 = vld [vmem:[#allocation7 + $0x8] sm:$0xff]  ;;  %v61_v4 = vld [vmem:[#allocation7 + $0x10] sm:$0xff]  ;;  %v62_v6 = vld [vmem:[#allocation7 + $0x18] sm:$0xff]  ;;  %vm74_vm1 = vcmask 523264   ;;  %s408_s30 = smov 64   ;;  %s409_s6 = smov 32  }
  0x39   :  { %v250_v5 = vpack.c.bf16 %v60_v3, %v59_v2  ;;  %v253_v7 = vpack.c.bf16 %v62_v6, %v61_v4  ;;  %v63_v8 = vld [vmem:[#allocation7 + $0x20] sm:$0xff]  ;;  %v64_v9 = vld [vmem:[#allocation7 + $0x28] sm:$0xff]  ;;  %v65_v11 = vld [vmem:[#allocation7 + $0x30] sm:$0xff]  ;;  %vm181_vm2 = vcmask 261120   ;;  %s411_s7 = smov [#allocation9]  }
  0x3a   :  { %v256_v10 = vpack.c.bf16 %v64_v9, %v63_v8  ;;  %v66_v12 = vld [vmem:[#allocation7 + $0x38] sm:$0xff]  ;;  %v58_v14 = vld [vmem:[#allocation2] sm:$0xff]  ;;  %s204_s8 = sshll.u32 %s411_s7, 4  ;;  %s205_s8 = int_to_ptr.vmem [resolvable:$true] %s204_s8 }
  0x3b   :  { %251 = vmatpush3.bf16.msra.mxu0 %v250_v5  ;;  %v259_v13 = vpack.c.bf16 %v66_v12, %v65_v11  ;;  %v218_v15 = vld [vmem:[%s514_s3] ss:$0 sm:$0xff]  ;;  %v148_v20 = vld [vmem:[#allocation5] sm:$0xff]  ;;  %s410_s3 = smov 96   ;;  %s348_s9 = scalar_lea.vmem %s205_s8, 128 }
  0x3c   :  { %252 = vmatprep.subr.bf16.mxu0 %v405_v0  ;;  %p349_p10 = scmp.ne.s32.totalorder %s205_s8, %s348_s9  ;;  %p353_p11 = scmp.lt.s32.totalorder %s205_s8, %s205_s8 }
  0x3d   :  { %p354_p12 = scmp.lt.s32.totalorder %s348_s9, %s348_s9 }
  0x3f   :  { %254 = vmatpush3.bf16.msra.mxu0 %v253_v7  ;;  %p355_p13 = por %p354_p12, %p353_p11 }
  0x40   :  { %255 = vmatprep.subr.bf16.mxu0 %v405_v0 }
  0x41   :  { %p356_p0 = pnand %p355_p13, %p349_p10 }
  0x43   :  { %257 = vmatpush3.bf16.msra.mxu0 %v256_v10 }
  0x44   :  { %258 = vmatprep.subr.bf16.mxu0 %v405_v0 }
  0x47   :  { %260 = vmatpush3.bf16.msra.mxu0 %v259_v13 }
  0x4a   :  { %247 = vmatmul.mubr.msk.f32.vlgmr.msra.gmra.mrb[0].mxu0 %vm74_vm1, %v58_v14 }
 0x11d   :  { %v144_v16 = vpop.f32.mrb[0].mxu0 }
 0x11e   :  { %v145_v17 = vadd.f32 %v218_v15, %v144_v16  ;;  %v248_v18 = vpop.f32.mrb[1].mxu0 }
 0x120   :  { %274 = vtanh.f32 %v145_v17  ;;  %v220_v21 = vmul.f32 -1.442695, %v145_v17 }
 0x122   :  { %276 = vpow2.f32 %v220_v21 }
 0x12a   :  { %v275_v19 = vpop.eup %274 }
 0x12b   :  { %162 = vrot.lane.b32.xlu0 %v275_v19, %s408_s30 }
 0x12c   :  { %v277_v22 = vpop.eup %276 }
 0x12d   :  { %v152_v23 = vadd.f32 1.0, %v277_v22 }
 0x12f   :  { %156 = vrot.lane.b32.xlu0 %v148_v20, %s409_s6  ;;  %278 = vrcp.f32 %v152_v23 }
 0x139   :  { %v279_v24 = vpop.eup %278 }
 0x19d   :  { %v163_v25 = vpop.permute.xlu0 %162 }
 0x19e   :  { %v165_v26 = vmul.f32 %v279_v24, %v163_v25 }
 0x1a0   :  { %167 = vrot.lane.b32.xlu1 %v165_v26, %s409_s6 }
 0x1a1   :  { %v157_v27 = vpop.permute.xlu0 %156 }
 0x1a2   :  { %v159_v28 = vmul.f32 %v279_v24, %v157_v27 }
 0x212   :  { %v168_v29 = vpop.permute.xlu1 %167 }
 0x213   :  { %v170_v30 = vadd.f32 %v168_v29, %v159_v28 }
 0x215   :  { %280 = vtanh.f32 %v170_v30  ;;  %178 = vrot.lane.b32.xlu0 %v170_v30, %s410_s3 }
 0x21f   :  { %v281_v31 = vpop.eup %280 }
 0x220   :  { %173 = vrot.lane.b32.xlu1 %v281_v31, %s408_s30 }
 0x287   :  { %v179_v32 = vpop.permute.xlu0 %178 }
 0x288   :  { %182 = vst.msk [vmem:[#allocation9] sm:$0xff] %vm181_vm2, %v179_v32 }
 0x289   :  { %359 = shalt.err (!%p356_p0)
}
 0x28a   :  { %s360_s12 = scalar_lea.hbm %s516_s5, 128 }
 0x28b   :  { %p361_p1 = scmp.ne.s32.totalorder %s516_s5, %s360_s12  ;;  %p364_p2 = scmp.lt.u32.totalorder %s360_s12, %s516_s5 }
 0x28d   :  { %p366_p3 = pnand %p364_p2, %p361_p1 }
 0x28f   :  { %369 = shalt.err (!%p366_p3)
}
 0x290   :  { %207 = dma.vmem_to_hbm [thread:$0]  %s205_s8, 128, %s516_s5, [#allocation10]  }
 0x291   :  { %s412_s18 = smov [#allocation8]  }
 0x292   :  { %v174_v33 = vpop.permute.xlu1 %173  ;;  %s194_s19 = sshll.u32 %s412_s18, 4  ;;  %s195_s19 = int_to_ptr.vmem [resolvable:$true] %s194_s19 }
 0x293   :  { %v176_v34 = vmul.f32 %v279_v24, %v174_v33  ;;  %s370_s20 = scalar_lea.vmem %s195_s19, 128  ;;  %p375_p5 = scmp.lt.s32.totalorder %s195_s19, %s195_s19 }
 0x294   :  { %p371_p4 = scmp.ne.s32.totalorder %s195_s19, %s370_s20  ;;  %p376_p6 = scmp.lt.s32.totalorder %s370_s20, %s370_s20 }
 0x295   :  { %184 = vrot.lane.b32.xlu1 %v176_v34, %s409_s6 }
 0x296   :  { %p377_p7 = por %p376_p6, %p375_p5 }
 0x298   :  { %p378_p8 = pnand %p377_p7, %p371_p4 }
 0x307   :  { %v185_v35 = vpop.permute.xlu1 %184 }
 0x308   :  { %187 = vst.msk [vmem:[#allocation8] sm:$0xff] %vm181_vm2, %v185_v35 }
 0x309   :  { %381 = shalt.err (!%p378_p8)
}
 0x30a   :  { %s382_s5 = scalar_lea.hbm %s515_s4, 128 }
 0x30b   :  { %p383_p9 = scmp.ne.s32.totalorder %s515_s4, %s382_s5  ;;  %p386_p10 = scmp.lt.u32.totalorder %s382_s5, %s515_s4 }
 0x30d   :  { %p388_p11 = pnand %p386_p10, %p383_p9 }
 0x30f   :  { %391 = shalt.err (!%p388_p11)
}
 0x310   :  { %197 = dma.vmem_to_hbm [thread:$0]  %s195_s19, 128, %s515_s4, [#allocation4]  }
 0x311   :  { %396 = dma.done.wait [#allocation4], 128  }
 0x312   :  { %397 = vsyncadd [#allocation4], 4294967168 }
 0x313   :  { %398 = dma.done.wait [#allocation10], 128  }
 0x314   :  { %399 = vsyncadd [#allocation10], 4294967168 }
 0x315   :  { %214 = vsyncpa [#allocation3], 1 }
 0x316   :  { %215 = vsyncpa [#allocation6], 1 }
 0x317   :  { %216 = vsyncpa [#allocation4], 1 }
 0x318   :  { %217 = vsyncpa [#allocation10], 1 }

</bundles_post_ra>
